<compile_context>
chip_gen: v7x
topology: tpu7x:2x2x1
jax: 0.10.0
libtpu: 0.0.40
codegen_flags: <defaults>
</compile_context>

<pallas_src>
import jax
import jax.numpy as jnp
from jax.experimental import pallas as pl
from jax.experimental.pallas import tpu as pltpu

BETA = 100.0
THRESHOLD = 20.0  # PyTorch F.softplus default threshold

_LANE = 128
_SUBLANE = 8
# Target ~2 MiB (f32) moved per grid step: big enough to sit near the HBM
# roofline on v5e/v6e/v7x, small enough (x4 pipeline buffers = 8 MiB) to fit
# every generation's default scoped-VMEM limit without compiler params.
_BLOCK_ELEMS = 512 * 1024


def _softplus_kernel(x_ref, o_ref):
    x = x_ref[...]
    xf = x.astype(jnp.float32)
    bx = BETA * xf
    # Clamp the exp argument in the "linear" region so we never overflow;
    # those lanes are overwritten by jnp.where anyway.
    safe_bx = jnp.minimum(bx, THRESHOLD)
    soft = jnp.log1p(jnp.exp(safe_bx)) * (1.0 / BETA)
    y = jnp.where(bx > THRESHOLD, xf, soft)
    o_ref[...] = y.astype(o_ref.dtype)


def _pick_lane_width(n):
    """Widest lane-dense last dim (multiple of 128) that divides n exactly."""
    for w in (4096, 2048, 1024, 512, 256, 128):
        if n % w == 0:
            return w
    return None


def softplus_pallas(x):
    """Elementwise softplus(beta=100, threshold=20), matching F.softplus."""
    orig_shape = x.shape
    orig_dtype = x.dtype
    n = x.size
    if n == 0:
        return x

    flat = x.reshape(-1)  # layout-preserving reshape: no HBM copy

    w = _pick_lane_width(n)
    padded_n = n
    if w is None:
        # Fallback only for element counts not divisible by 128: minimal pad
        # to a 128-lane multiple (the only path that pays extra HBM copies).
        padded_n = pl.cdiv(n, _LANE) * _LANE
        flat = jnp.pad(flat, (0, padded_n - n))
        w = _pick_lane_width(padded_n)

    rows = padded_n // w
    tile_rows = max(_SUBLANE, _BLOCK_ELEMS // w)
    if rows <= tile_rows:
        # Single grid step; full-extent row block (allowed even if rows % 8 != 0).
        tile_rows = rows
    grid = (pl.cdiv(rows, tile_rows),)  # ragged last block handled by Pallas

    x2d = flat.reshape(rows, w)  # layout-preserving reshape: no HBM copy

    out2d = pl.pallas_call(
        _softplus_kernel,
        out_shape=jax.ShapeDtypeStruct((rows, w), orig_dtype),
        grid_spec=pltpu.PrefetchScalarGridSpec(
            num_scalar_prefetch=0,
            grid=grid,
            in_specs=[pl.BlockSpec((tile_rows, w), lambda i: (i, 0))],
            out_specs=pl.BlockSpec((tile_rows, w), lambda i: (i, 0)),
        ),
        compiler_params=pltpu.CompilerParams(
            dimension_semantics=("parallel",),
        ),
    )(x2d)

    out_flat = out2d.reshape(-1)
    if padded_n != n:
        out_flat = out_flat[:n]
    return out_flat.reshape(orig_shape)


def softplus_module_forward(t, x):
    """Mirror of Softplus.forward(t, x): t is unused."""
    del t
    return softplus_pallas(x)


def _softplus_ref(x):
    xf = x.astype(jnp.float32)
    bx = BETA * xf
    soft = jnp.log1p(jnp.exp(jnp.minimum(bx, THRESHOLD))) / BETA
    return jnp.where(bx > THRESHOLD, xf, soft).astype(x.dtype)


if __name__ == "__main__":
    key = jax.random.PRNGKey(0)
    k_t, k_x = jax.random.split(key)

    # NCHW input, small shape (2048 elems -> no-pad, lane-dense path).
    x = jax.random.normal(k_x, (2, 4, 16, 16), dtype=jnp.float32)
    t = jax.random.uniform(k_t, (2,), dtype=jnp.float32)  # ignored by the module

    y = jax.block_until_ready(softplus_module_forward(t, x))
    y_ref = _softplus_ref(x)
    assert y.shape == x.shape and y.dtype == x.dtype
    assert jnp.allclose(y, y_ref, atol=1e-6, rtol=1e-6)

    # Also exercise the non-128-aligned fallback (pad + slice) path.
    x_odd = jax.random.normal(k_x, (3, 5, 7), dtype=jnp.float32)
    y_odd = jax.block_until_ready(softplus_pallas(x_odd))
    assert y_odd.shape == x_odd.shape and y_odd.dtype == x_odd.dtype
    assert jnp.allclose(y_odd, _softplus_ref(x_odd), atol=1e-6, rtol=1e-6)

    print("KERNEL_OK")
</pallas_src>

<mosaic_0001>
module attributes {stable_mosaic.version = 11 : i64} {
  func.func @_softplus_kernel(%arg0: i32, %arg1: memref<1x2048xf32, #tpu.memory_space<vmem>>, %arg2: memref<1x2048xf32, #tpu.memory_space<vmem>>) attributes {dimension_semantics = [#tpu.dimension_semantics<parallel>], iteration_bounds = array<i64: 1>, scalar_prefetch = 0 : i64, scratch_operands = 0 : i64, tpu.core_type = #tpu.core_type<tc>, window_params = [{transform_indices = @transform_0, window_bounds = array<i64: 1, 2048>}, {transform_indices = @transform_1, window_bounds = array<i64: 1, 2048>}]} {
    %c0 = arith.constant 0 : index
    %c0_0 = arith.constant 0 : index
    %0 = vector.load %arg1[%c0, %c0_0] : memref<1x2048xf32, #tpu.memory_space<vmem>>, vector<1x2048xf32>
    %cst = arith.constant 1.000000e+02 : f32
    %1 = vector.broadcast %cst : f32 to vector<1x2048xf32>
    %2 = arith.mulf %1, %0 : vector<1x2048xf32>
    %cst_1 = arith.constant 2.000000e+01 : f32
    %3 = vector.broadcast %cst_1 : f32 to vector<1x2048xf32>
    %4 = arith.minimumf %2, %3 : vector<1x2048xf32>
    %5 = math.exp %4 : vector<1x2048xf32>
    %6 = math.log1p %5 : vector<1x2048xf32>
    %cst_2 = arith.constant 0.00999999977 : f32
    %7 = vector.broadcast %cst_2 : f32 to vector<1x2048xf32>
    %8 = arith.mulf %6, %7 : vector<1x2048xf32>
    %cst_3 = arith.constant 2.000000e+01 : f32
    %9 = vector.broadcast %cst_3 : f32 to vector<1x2048xf32>
    %10 = arith.cmpf ogt, %2, %9 : vector<1x2048xf32>
    %11 = arith.select %10, %0, %8 : vector<1x2048xi1>, vector<1x2048xf32>
    %c0_4 = arith.constant 0 : index
    %c0_5 = arith.constant 0 : index
    %12 = vector.load %arg2[%c0_4, %c0_5] : memref<1x2048xf32, #tpu.memory_space<vmem>>, vector<1x2048xf32>
    tpu.vector_store %arg2[%c0_4, %c0_5], %11 {strides = array<i32>} : memref<1x2048xf32, #tpu.memory_space<vmem>>, vector<1x2048xf32>,
    return
  }
  func.func @transform_0(%arg0: i32) -> (i32, i32) {
    %c0_i32 = arith.constant 0 : i32
    %c0_i32_0 = arith.constant 0 : i32
    return %arg0, %c0_i32 : i32, i32
  }
  func.func @transform_1(%arg0: i32) -> (i32, i32) {
    %c0_i32 = arith.constant 0 : i32
    %c0_i32_0 = arith.constant 0 : i32
    return %arg0, %c0_i32 : i32, i32
  }
}

</mosaic_0001>

<bundles_post_ra>
// kernel: tpu_custom_call.1
= control target key start
LH: loop header
LB: loop body
LE: loop exit
PB: predicated region body
PF: predicated region fallthrough
CT: control target
= control target key end

     0   :  { %6 = vsyncpa [#allocation3], 0  ;;  %s166_s0 = inlined_call_operand.hbm [shape: f32[1,2048], index: 0, kind: input, shape index: {}]   ;;  %s167_s1 = inlined_call_operand.hbm [shape: f32[1,2048], index: 1, kind: output, shape index: {}]  }
   0x1   :  { %7 = vsyncpa [#allocation4], 0  ;;  %s130_s6 = smov [#allocation2]   ;;  %s82_s10 = scalar_lea.hbm %s166_s0, 256 }
   0x2   :  { %s14_s7 = sshll.u32 %s130_s6, 4  ;;  %p83_p0 = scmp.ne.s32.totalorder %s166_s0, %s82_s10  ;;  %s15_s7 = int_to_ptr.vmem [resolvable:$true] %s14_s7 }
   0x3   :  { %p86_p1 = scmp.lt.u32.totalorder %s82_s10, %s166_s0 }
   0x5   :  { %p88_p2 = pnand %p86_p1, %p83_p0 }
   0x7   :  { %91 = shalt.err (!%p88_p2)
}
   0x8   :  { %s92_s15 = scalar_lea.vmem %s15_s7, 256  ;;  %p97_p4 = scmp.lt.s32.totalorder %s15_s7, %s15_s7 }
   0x9   :  { %p93_p3 = scmp.ne.s32.totalorder %s15_s7, %s92_s15  ;;  %p98_p5 = scmp.lt.s32.totalorder %s92_s15, %s92_s15 }
   0xb   :  { %p99_p6 = por %p98_p5, %p97_p4 }
   0xd   :  { %p100_p7 = pnand %p99_p6, %p93_p3 }
   0xf   :  { %103 = shalt.err (!%p100_p7)
}
  0x10   :  { %17 = dma.hbm_to_vmem [thread:$0]  %s166_s0, 256, %s15_s7, [#allocation3]  }
  0x11   :  { %126 = dma.done.wait [#allocation3], 256  }
  0x12   :  { %127 = vsyncadd [#allocation3], 4294967040  ;;  %v21_v0 = vld [vmem:[#allocation2] sm:$0xff]  ;;  %v22_v1 = vld [vmem:[#allocation2 + $0x8] sm:$0xff]  ;;  %s131_s0 = smov [#allocation5]  }
  0x13   :  { %v23_v2 = vmul.f32 100.0, %v21_v0  ;;  %v24_v3 = vmul.f32 100.0, %v22_v1  ;;  %s63_s18 = sshll.u32 %s131_s0, 4  ;;  %s64_s18 = int_to_ptr.vmem [resolvable:$true] %s63_s18 }
  0x14   :  { %s104_s19 = scalar_lea.vmem %s64_s18, 256  ;;  %p109_p9 = scmp.lt.s32.totalorder %s64_s18, %s64_s18 }
  0x15   :  { %v25_v4 = vmin.f32 %v23_v2, 20.0  ;;  %v26_v5 = vmin.f32 %v24_v3, 20.0  ;;  %vm51_vm2 = vcmp.gt.f32.partialorder %v23_v2, 20.0  ;;  %vm52_vm3 = vcmp.gt.f32.partialorder %v24_v3, 20.0  ;;  %p105_p8 = scmp.ne.s32.totalorder %s64_s18, %s104_s19  ;;  %p110_p10 = scmp.lt.s32.totalorder %s104_s19, %s104_s19 }
  0x17   :  { %v27_v6 = vmul.f32 1.442695, %v25_v4  ;;  %v29_v7 = vmul.f32 1.442695, %v26_v5  ;;  %p111_p11 = por %p110_p10, %p109_p9 }
  0x19   :  { %74 = vpow2.f32 %v27_v6  ;;  %p112_p12 = pnand %p111_p11, %p105_p8 }
  0x1a   :  { %76 = vpow2.f32 %v29_v7 }
  0x23   :  { %v75_v8 = vpop.eup %74 }
  0x24   :  { %v77_v9 = vpop.eup %76  ;;  %v31_v10 = vadd.f32 1.0, %v75_v8  ;;  %v34_v12 = vmul.f32 -0.5, %v75_v8  ;;  %v37_v15 = vand.u32 2147483647, %v75_v8 }
  0x25   :  { %v40_v11 = vadd.f32 1.0, %v77_v9  ;;  %v43_v13 = vmul.f32 -0.5, %v77_v9  ;;  %v46_v17 = vand.u32 2147483647, %v77_v9 }
  0x26   :  { %78 = vlog2.f32 %v31_v10  ;;  %v35_v14 = vadd.f32 1.0, %v34_v12  ;;  %vm38_vm0 = vcmp.lt.f32.partialorder %v37_v15, 0.0004427343 }
  0x27   :  { %80 = vlog2.f32 %v40_v11  ;;  %v44_v16 = vadd.f32 1.0, %v43_v13  ;;  %vm47_vm1 = vcmp.lt.f32.partialorder %v46_v17, 0.0004427343 }
  0x28   :  { %v36_v18 = vmul.f32 %v75_v8, %v35_v14 }
  0x29   :  { %v45_v20 = vmul.f32 %v77_v9, %v44_v16 }
  0x30   :  { %v79_v19 = vpop.eup %78 }
  0x31   :  { %v81_v21 = vpop.eup %80  ;;  %v33_v22 = vmul.f32 0.6931472, %v79_v19 }
  0x32   :  { %v42_v23 = vmul.f32 0.6931472, %v81_v21 }
  0x33   :  { %v39_v24 = vsel %vm38_vm0, %v36_v18, %v33_v22 }
  0x34   :  { %v49_v25 = vmul.f32 0.01, %v39_v24  ;;  %v48_v26 = vsel %vm47_vm1, %v45_v20, %v42_v23 }
  0x35   :  { %v50_v27 = vmul.f32 0.01, %v48_v26 }
  0x36   :  { %v53_v28 = vsel %vm51_vm2, %v21_v0, %v49_v25 }
  0x37   :  { %55 = vst [vmem:[#allocation5] sm:$0xff] %v53_v28  ;;  %v54_v29 = vsel %vm52_vm3, %v22_v1, %v50_v27 }
  0x38   :  { %56 = vst [vmem:[#allocation5 + $0x8] sm:$0xff] %v54_v29 }
  0x39   :  { %115 = shalt.err (!%p112_p12)
}
  0x3a   :  { %s116_s22 = scalar_lea.hbm %s167_s1, 256 }
  0x3b   :  { %p117_p13 = scmp.ne.s32.totalorder %s167_s1, %s116_s22  ;;  %p120_p0 = scmp.lt.u32.totalorder %s116_s22, %s167_s1 }
  0x3d   :  { %p122_p1 = pnand %p120_p0, %p117_p13 }
  0x3f   :  { %125 = shalt.err (!%p122_p1)
}
  0x40   :  { %66 = dma.vmem_to_hbm [thread:$0]  %s64_s18, 256, %s167_s1, [#allocation4]  }
  0x41   :  { %128 = dma.done.wait [#allocation4], 256  }
  0x42   :  { %129 = vsyncadd [#allocation4], 4294967040 }
  0x43   :  { %70 = vsyncpa [#allocation3], 1 }
  0x44   :  { %71 = vsyncpa [#allocation4], 1 }

</bundles_post_ra>
